<compile_context>
chip_gen: v7x
topology: tpu7x:2x2x1
jax: 0.10.0
libtpu: 0.0.40
codegen_flags: <defaults>
</compile_context>

<pallas_src>
import functools

import jax
import jax.numpy as jnp
from jax.experimental import pallas as pl
from jax.experimental.pallas import tpu as pltpu


def _round_up(v: int, m: int) -> int:
    return ((v + m - 1) // m) * m


def _linreg_kernel(seed_ref, x_ref, w_ref, b_ref, o_ref, *, phi: float):
    # seed_ref : SMEM scalar-prefetch, shape (1,), int32
    # x_ref    : (tg, K) packed input tile in VMEM (K = k * p lanes)
    # w_ref    : (K, k)  block-diagonal weight (dropout scale folded in), resident
    # b_ref    : (1, 1)  bias, resident
    # o_ref    : (tg, k) packed output tile
    x = x_ref[...]
    tg, K = x_ref.shape

    if 0.0 < phi < 1.0:
        seed = seed_ref[0].astype(jnp.uint32)
        row0 = pl.program_id(0) * tg

        # Per-row hash on a (tg, 1) column: costs ~1/ (K/128) of a full-tile op
        # per op, so its mixing is cheap.
        r = jax.lax.broadcasted_iota(jnp.int32, (tg, 1), 0) + row0
        hr = r.astype(jnp.uint32) * jnp.uint32(0x9E3779B1) + seed
        hr = hr ^ (hr >> jnp.uint32(16))
        hr = hr * jnp.uint32(0x85EBCA6B)

        # Per-column hash on a (1, K) row: a handful of vregs, negligible.
        c = jax.lax.broadcasted_iota(jnp.int32, (1, K), 1)
        hc = c.astype(jnp.uint32) * jnp.uint32(0x85EBCA77)
        hc = hc ^ (hc >> jnp.uint32(15))
        hc = hc * jnp.uint32(0xC2B2AE35)
        hc = hc ^ (hc >> jnp.uint32(16))

        # Per-element combine: one xor + one multiply + one xor-shift.
        h = hr ^ hc
        h = h * jnp.uint32(0x27D4EB2F)
        h = h ^ (h >> jnp.uint32(15))

        # Full-32-bit keep test in the signed domain (bitcast is free):
        # P(keep) = P(int32(h) >= t) = 1 - phi  with  t = (phi - 0.5) * 2^32.
        t = int(round((phi - 0.5) * 4294967296.0))
        t = max(-(2 ** 31), min(2 ** 31 - 1, t))
        keep = pltpu.bitcast(h, jnp.int32) >= jnp.int32(t)
        x = jnp.where(keep, x, jnp.float32(0.0))

    # Linear(p, 1) on k packed rows at once: MXU matmul with the block-diagonal
    # weight does both the per-row multiply-by-w and the segmented reduce,
    # keeping the saturated VALU slots free for the dropout hash.
    out = jnp.dot(x, w_ref[...], preferred_element_type=jnp.float32)  # (tg, k)
    o_ref[...] = (out + b_ref[...]).astype(o_ref.dtype)


@functools.partial(jax.jit,
                   static_argnames=("phi", "training", "target_block_bytes"))
def linear_reg_forward(x, weight, bias, seed=0, *, phi,
                       training=True, target_block_bytes=2 * 1024 * 1024):
    """Forward pass of LinearReg: dropout(x) @ W^T + b.

    x      : (N, p) float32
    weight : (1, p) float32   (torch Linear layout)
    bias   : (1,)   float32
    """
    N, p = x.shape
    eff_phi = float(phi) if training else 0.0

    # Dropout survivor scale 1/(1-phi) folded into the weight; phi >= 1 drops
    # everything (output == bias) without any in-kernel hash work.
    w = weight.reshape(1, p).astype(jnp.float32)
    if eff_phi >= 1.0:
        w_eff = jnp.zeros_like(w)
        kernel_phi = 0.0
    elif eff_phi > 0.0:
        w_eff = w * jnp.float32(1.0 / (1.0 - eff_phi))
        kernel_phi = eff_phi
    else:
        w_eff = w
        kernel_phi = 0.0

    # Lane packing: fold k batch rows into one packed row of K = k*p lanes
    # (target K ~ 256-512); k must divide N so the reshape is a pure bitcast.
    k = max(1, min(128, 512 // p, N))
    while k > 1 and N % k != 0:
        k //= 2
    K = k * p
    Np = N // k
    x_packed = x.astype(jnp.float32).reshape(Np, K)

    # Block-diagonal weight: out_packed[g, j] = sum_f x[g*k + j, f] * w[f].
    if k > 1:
        eye = jnp.eye(k, dtype=jnp.float32)                         # (k, k)
        w_bd = (eye[:, None, :] * w_eff.reshape(1, p, 1)).reshape(K, k)
    else:
        w_bd = w_eff.reshape(p, 1)

    # Adaptive row tile: ~target_block_bytes per input block, multiple of 8,
    # capped so the grid keeps >=2 steps (v7x megacore) when possible.
    tg = max(8, (target_block_bytes // (4 * K)) // 8 * 8)
    tg = min(tg, 8192)
    if Np >= 16:
        tg = min(tg, _round_up(-(-Np // 2), 8))
    if tg >= Np:
        tg = Np                      # single block == full array dim (legal)
    grid = (pl.cdiv(Np, tg),)        # ragged last tile is clipped on writeback

    seed_arr = jnp.asarray(seed, dtype=jnp.int32).reshape(1)
    bias2d = bias.reshape(1, 1).astype(jnp.float32)

    kernel = functools.partial(_linreg_kernel, phi=kernel_phi)

    out_packed = pl.pallas_call(
        kernel,
        out_shape=jax.ShapeDtypeStruct((Np, k), jnp.float32),
        grid_spec=pltpu.PrefetchScalarGridSpec(
            num_scalar_prefetch=1,
            grid=grid,
            in_specs=[
                pl.BlockSpec((tg, K), lambda i, s: (i, 0)),
                pl.BlockSpec((K, k), lambda i, s: (0, 0)),   # resident weight
                pl.BlockSpec((1, 1), lambda i, s: (0, 0)),   # resident bias
            ],
            out_specs=pl.BlockSpec((tg, k), lambda i, s: (i, 0)),
        ),
        compiler_params=pltpu.CompilerParams(
            dimension_semantics=("parallel",),
            vmem_limit_bytes=32 * 1024 * 1024),
    )(seed_arr, x_packed, w_bd, bias2d)

    # (Np, k) -> (N, 1) is a contiguous reshape (row g*k + j == packed [g, j]).
    return out_packed.reshape(N, 1)


if __name__ == "__main__":
    # Small shapes consistent with the module: p features, N samples.
    N, p = 8, 32
    phi = 0.5

    key = jax.random.PRNGKey(0)
    kx, kw, kb = jax.random.split(key, 3)

    x = jax.random.normal(kx, (N, p), dtype=jnp.float32)

    # torch.nn.Linear(p, 1) init: U(-1/sqrt(p), 1/sqrt(p)) for weight and bias.
    bound = 1.0 / (p ** 0.5)
    weight = jax.random.uniform(kw, (1, p), dtype=jnp.float32,
                                minval=-bound, maxval=bound)
    bias = jax.random.uniform(kb, (1,), dtype=jnp.float32,
                              minval=-bound, maxval=bound)

    # Training-mode forward (dropout active, in-kernel hash PRNG).
    out_train = linear_reg_forward(x, weight, bias, 42, phi=phi, training=True)
    jax.block_until_ready(out_train)
    assert out_train.shape == (N, 1)
    assert bool(jnp.all(jnp.isfinite(out_train)))

    # Eval-mode forward (dropout is identity) — check against plain JAX.
    out_eval = linear_reg_forward(x, weight, bias, 0, phi=phi, training=False)
    jax.block_until_ready(out_eval)
    ref_eval = x @ weight.T + bias
    assert out_eval.shape == (N, 1)
    assert jnp.allclose(out_eval, ref_eval, atol=1e-4, rtol=1e-4), (
        float(jnp.max(jnp.abs(out_eval - ref_eval))))

    # Statistical check of the dropout path on a multi-tile grid: with x = 1,
    # w = 1/p, b = 0 the expected output is 1.0 (P(keep)=1-phi, scale 1/(1-phi)).
    Ns = 4096
    xs = jnp.ones((Ns, p), dtype=jnp.float32)
    ws = jnp.full((1, p), 1.0 / p, dtype=jnp.float32)
    bs = jnp.zeros((1,), dtype=jnp.float32)
    out_stat = linear_reg_forward(xs, ws, bs, 123, phi=phi, training=True)
    jax.block_until_ready(out_stat)
    mean = float(jnp.mean(out_stat))
    std = float(jnp.std(out_stat))
    assert abs(mean - 1.0) < 0.05, f"dropout mean check failed: {mean}"
    # Masks must differ across rows/tiles (not a constant replicated mask).
    assert std > 1e-3, f"dropout masks look degenerate: std={std}"

    print("KERNEL_OK")
</pallas_src>

<mosaic_0001>
module attributes {stable_mosaic.version = 11 : i64} {
  func.func @_linreg_kernel(%arg0: i32, %arg1: memref<1xi32, #tpu.memory_space<smem>>, %arg2: memref<1x256xf32, #tpu.memory_space<vmem>>, %arg3: memref<256x8xf32, #tpu.memory_space<vmem>>, %arg4: memref<1x1xf32, #tpu.memory_space<vmem>>, %arg5: memref<1x8xf32, #tpu.memory_space<vmem>>) attributes {dimension_semantics = [#tpu.dimension_semantics<parallel>], iteration_bounds = array<i64: 1>, scalar_prefetch = 1 : i64, scratch_operands = 0 : i64, tpu.core_type = #tpu.core_type<tc>, window_params = [{transform_indices = @transform_0, window_bounds = array<i64: 1, 256>}, {pipeline_mode = #tpu.pipeline_mode<synchronous>, transform_indices = @transform_1, window_bounds = array<i64: 256, 8>}, {pipeline_mode = #tpu.pipeline_mode<synchronous>, transform_indices = @transform_2, window_bounds = array<i64: 1, 1>}, {transform_indices = @transform_3, window_bounds = array<i64: 1, 8>}]} {
    %c0 = arith.constant 0 : index
    %c0_0 = arith.constant 0 : index
    %0 = vector.load %arg2[%c0, %c0_0] : memref<1x256xf32, #tpu.memory_space<vmem>>, vector<1x256xf32>
    %c0_1 = arith.constant 0 : index
    %1 = memref.load %arg1[%c0_1] : memref<1xi32, #tpu.memory_space<smem>>
    %c1_i32 = arith.constant 1 : i32
    %2 = arith.muli %arg0, %c1_i32 : i32
    %3 = tpu.iota {dimensions = array<i32: 0>} : vector<1x1xi32>
    %4 = vector.broadcast %2 : i32 to vector<1x1xi32>
    %5 = arith.addi %3, %4 : vector<1x1xi32>
    %c-1640531535_i32 = arith.constant -1640531535 : i32
    %6 = vector.broadcast %c-1640531535_i32 : i32 to vector<1x1xi32>
    %7 = arith.muli %5, %6 : vector<1x1xi32>
    %8 = vector.broadcast %1 : i32 to vector<1x1xi32>
    %9 = arith.addi %7, %8 : vector<1x1xi32>
    %c16_i32 = arith.constant 16 : i32
    %10 = vector.broadcast %c16_i32 : i32 to vector<1x1xi32>
    %11 = arith.shrui %9, %10 : vector<1x1xi32>
    %12 = arith.xori %9, %11 : vector<1x1xi32>
    %c-2048144789_i32 = arith.constant -2048144789 : i32
    %13 = vector.broadcast %c-2048144789_i32 : i32 to vector<1x1xi32>
    %14 = arith.muli %12, %13 : vector<1x1xi32>
    %15 = tpu.iota {dimensions = array<i32: 1>} : vector<1x256xi32>
    %c-2048144777_i32 = arith.constant -2048144777 : i32
    %16 = vector.broadcast %c-2048144777_i32 : i32 to vector<1x256xi32>
    %17 = arith.muli %15, %16 : vector<1x256xi32>
    %c15_i32 = arith.constant 15 : i32
    %18 = vector.broadcast %c15_i32 : i32 to vector<1x256xi32>
    %19 = arith.shrui %17, %18 : vector<1x256xi32>
    %20 = arith.xori %17, %19 : vector<1x256xi32>
    %c-1028477387_i32 = arith.constant -1028477387 : i32
    %21 = vector.broadcast %c-1028477387_i32 : i32 to vector<1x256xi32>
    %22 = arith.muli %20, %21 : vector<1x256xi32>
    %c16_i32_2 = arith.constant 16 : i32
    %23 = vector.broadcast %c16_i32_2 : i32 to vector<1x256xi32>
    %24 = arith.shrui %22, %23 : vector<1x256xi32>
    %25 = arith.xori %22, %24 : vector<1x256xi32>
    %26 = vector.broadcast %14 : vector<1x1xi32> to vector<1x256xi32>
    %27 = arith.xori %26, %25 : vector<1x256xi32>
    %c668265263_i32 = arith.constant 668265263 : i32
    %28 = vector.broadcast %c668265263_i32 : i32 to vector<1x256xi32>
    %29 = arith.muli %27, %28 : vector<1x256xi32>
    %c15_i32_3 = arith.constant 15 : i32
    %30 = vector.broadcast %c15_i32_3 : i32 to vector<1x256xi32>
    %31 = arith.shrui %29, %30 : vector<1x256xi32>
    %32 = arith.xori %29, %31 : vector<1x256xi32>
    %33 = tpu.bitcast %32 : vector<1x256xi32> -> vector<1x256xi32>
    %c0_i32 = arith.constant 0 : i32
    %34 = vector.broadcast %c0_i32 : i32 to vector<1x256xi32>
    %35 = arith.cmpi sge, %33, %34 : vector<1x256xi32>
    %cst = arith.constant 0.000000e+00 : f32
    %36 = vector.broadcast %cst : f32 to vector<1x256xf32>
    %37 = arith.select %35, %0, %36 : vector<1x256xi1>, vector<1x256xf32>
    %c0_4 = arith.constant 0 : index
    %c0_5 = arith.constant 0 : index
    %38 = vector.load %arg3[%c0_4, %c0_5] : memref<256x8xf32, #tpu.memory_space<vmem>>, vector<256x8xf32>
    %cst_6 = arith.constant dense<0.000000e+00> : vector<1x8xf32>
    %39 = tpu.matmul %37, %38, %cst_6 {dimension_numbers = #tpu.dot_dimension_numbers<[1], [0], [0], [1], [0, 0, 1, 1], [], []>} : vector<1x256xf32>, vector<256x8xf32>, vector<1x8xf32> -> vector<1x8xf32>
    %c0_7 = arith.constant 0 : index
    %c0_8 = arith.constant 0 : index
    %40 = vector.load %arg4[%c0_7, %c0_8] : memref<1x1xf32, #tpu.memory_space<vmem>>, vector<1x1xf32>
    %41 = vector.broadcast %40 : vector<1x1xf32> to vector<1x8xf32>
    %42 = arith.addf %39, %41 : vector<1x8xf32>
    %c0_9 = arith.constant 0 : index
    %c0_10 = arith.constant 0 : index
    %43 = vector.load %arg5[%c0_9, %c0_10] : memref<1x8xf32, #tpu.memory_space<vmem>>, vector<1x8xf32>
    tpu.vector_store %arg5[%c0_9, %c0_10], %42 {strides = array<i32>} : memref<1x8xf32, #tpu.memory_space<vmem>>, vector<1x8xf32>,
    return
  }
  func.func @transform_0(%arg0: i32, %arg1: memref<1xi32, #tpu.memory_space<smem>>) -> (i32, i32) {
    %c0_i32 = arith.constant 0 : i32
    %c0_i32_0 = arith.constant 0 : i32
    return %arg0, %c0_i32 : i32, i32
  }
  func.func @transform_1(%arg0: i32, %arg1: memref<1xi32, #tpu.memory_space<smem>>) -> (i32, i32) {
    %c0_i32 = arith.constant 0 : i32
    %c0_i32_0 = arith.constant 0 : i32
    %c0_i32_1 = arith.constant 0 : i32
    return %c0_i32, %c0_i32_0 : i32, i32
  }
  func.func @transform_2(%arg0: i32, %arg1: memref<1xi32, #tpu.memory_space<smem>>) -> (i32, i32) {
    %c0_i32 = arith.constant 0 : i32
    %c0_i32_0 = arith.constant 0 : i32
    %c0_i32_1 = arith.constant 0 : i32
    return %c0_i32, %c0_i32_0 : i32, i32
  }
  func.func @transform_3(%arg0: i32, %arg1: memref<1xi32, #tpu.memory_space<smem>>) -> (i32, i32) {
    %c0_i32 = arith.constant 0 : i32
    %c0_i32_0 = arith.constant 0 : i32
    return %arg0, %c0_i32 : i32, i32
  }
}

</mosaic_0001>

<bundles_post_ra>
// kernel: linear_reg_forward.1
= control target key start
LH: loop header
LB: loop body
LE: loop exit
PB: predicated region body
PF: predicated region fallthrough
CT: control target
= control target key end

     0   :  { %s442_s0 = inlined_call_operand.<no memory space> [shape: s32[1], index: 0, kind: input, shape index: {}]   ;;  %s443_s1 = inlined_call_operand.vmem [shape: f32[1,256], index: 1, kind: input, shape index: {}]   ;;  %s444_s2 = inlined_call_operand.vmem [shape: f32[256,8], index: 2, kind: input, shape index: {}]   ;;  %s445_s3 = inlined_call_operand.<no memory space> [shape: f32[1,1], index: 3, kind: input, shape index: {}]   ;;  %s446_s4 = inlined_call_operand.hbm [shape: f32[1,8], index: 4, kind: output, shape index: {}]  }
   0x1   :  { %v10_v0 = vstv %s445_s3 }
   0x2   :  { %11 = vst [vmem:[#allocation4] sm:$0x1] %v10_v0 }
   0x3   :  { %v85_v1 = vld [vmem:[%s444_s2 + $0x80] sm:$0xff]  ;;  %v86_v2 = vld [vmem:[%s444_s2 + $0x88] sm:$0xff]  ;;  %v21_v4 = vlaneseq  ;;  %v87_v7 = vld [vmem:[%s444_s2 + $0x90] sm:$0xff]  ;;  %v293_v9 = vmov 0   ;;  %v26_v18 = vstv %s442_s0 }
   0x4   :  { %v69_v3 = vld [vmem:[%s444_s2] sm:$0xff]  ;;  %v234_v5 = vpack.c.bf16 %v86_v2, %v85_v1  ;;  %v70_v6 = vld [vmem:[%s444_s2 + $0x8] sm:$0xff]  ;;  %v88_v8 = vld [vmem:[%s444_s2 + $0x98] sm:$0xff]  ;;  %268 = vset.pattern.permute.xlu0 %v293_v9 }
   0x5   :  { %v236_v10 = vpack.c.bf16 %v70_v6, %v69_v3  ;;  %v238_v11 = vpack.c.bf16 %v88_v8, %v87_v7  ;;  %v71_v12 = vld [vmem:[%s444_s2 + $0x10] sm:$0xff]  ;;  %v72_v13 = vld [vmem:[%s444_s2 + $0x18] sm:$0xff]  ;;  %v89_v14 = vld [vmem:[%s444_s2 + $0xa0] sm:$0xff]  ;;  %v350_v15 = vshrl.u32 %v21_v4, 7  ;;  %v32_v16 = vand.u32 127, %v21_v4 }
   0x6   :  { %235 = vmatprep.subr.bf16.mxu0 %v234_v5  ;;  %v90_v17 = vld [vmem:[%s444_s2 + $0xa8] sm:$0xff]  ;;  %v240_v19 = vpack.c.bf16 %v72_v13, %v71_v12  ;;  %v73_v23 = vld [vmem:[%s444_s2 + $0x20] sm:$0xff]  ;;  %v91_v25 = vld [vmem:[%s444_s2 + $0xb0] sm:$0xff] }
   0x7   :  { %237 = vmatpush3.bf16.msra.mxu0 %v236_v10  ;;  %v25_v20 = vmul.u32 2654435761, %v350_v15  ;;  %v33_v21 = vadd.s32 128, %v32_v16  ;;  %v242_v22 = vpack.c.bf16 %v90_v17, %v89_v14  ;;  %v74_v24 = vld [vmem:[%s444_s2 + $0x28] sm:$0xff]  ;;  %v92_v26 = vld [vmem:[%s444_s2 + $0xb8] sm:$0xff]  ;;  %v75_v34 = vld [vmem:[%s444_s2 + $0x30] sm:$0xff] }
   0x8   :  { %239 = vmatprep.subr.bf16.mxu0 %v238_v11  ;;  %v34_v29 = vmul.u32 2246822519, %v32_v16  ;;  %v244_v30 = vpack.c.bf16 %v74_v24, %v73_v23  ;;  %v246_v33 = vpack.c.bf16 %v92_v26, %v91_v25  ;;  %v76_v35 = vld [vmem:[%s444_s2 + $0x38] sm:$0xff]  ;;  %v93_v37 = vld [vmem:[%s444_s2 + $0xc0] sm:$0xff]  ;;  %v94_v38 = vld [vmem:[%s444_s2 + $0xc8] sm:$0xff] }
   0x9   :  { %v27_v27 = vadd.s32 %v26_v18, %v25_v20  ;;  %v35_v28 = vmul.u32 2246822519, %v33_v21  ;;  %v101_v42 = vld [vmem:[#allocation4] sm:$0x1] }
   0xa   :  { %v36_v36 = vshrl.u32 %v34_v29, 15 }
   0xb   :  { %241 = vmatpush3.bf16.msra.mxu0 %v240_v19  ;;  %v28_v31 = vshrl.u32 %v27_v27, 16  ;;  %v37_v32 = vshrl.u32 %v35_v28, 15 }
   0xc   :  { %243 = vmatprep.subr.bf16.mxu0 %v242_v22  ;;  %v38_v41 = vxor.u32 %v36_v36, %v34_v29 }
   0xd   :  { %v29_v39 = vxor.u32 %v28_v31, %v27_v27  ;;  %v39_v40 = vxor.u32 %v37_v32, %v35_v28 }
   0xe   :  { %12 = vsyncpa [#allocation6], 0  ;;  %v248_v43 = vpack.c.bf16 %v76_v35, %v75_v34  ;;  %104 = vperm.xlu0 %268, %v101_v42   ;;  %v250_v45 = vpack.c.bf16 %v94_v38, %v93_v37  ;;  %v77_v46 = vld [vmem:[%s444_s2 + $0x40] sm:$0xff]  ;;  %v78_v47 = vld [vmem:[%s444_s2 + $0x48] sm:$0xff]  ;;  %v40_v48 = vmul.u32 3266489909, %v38_v41 }
   0xf   :  { %245 = vmatpush3.bf16.msra.mxu0 %v244_v30  ;;  %v41_v44 = vmul.u32 3266489909, %v39_v40  ;;  %v95_v49 = vld [vmem:[%s444_s2 + $0xd0] sm:$0xff]  ;;  %v96_v50 = vld [vmem:[%s444_s2 + $0xd8] sm:$0xff]  ;;  %v30_v51 = vmul.u32 2246822507, %v29_v39  ;;  %v252_v54 = vpack.c.bf16 %v78_v47, %v77_v46 }
  0x10   :  { %247 = vmatprep.subr.bf16.mxu0 %v246_v33  ;;  %v42_v53 = vshrl.u32 %v40_v48, 16  ;;  %v254_v56 = vpack.c.bf16 %v96_v50, %v95_v49  ;;  %v79_v57 = vld [vmem:[%s444_s2 + $0x50] sm:$0xff]  ;;  %v80_v58 = vld [vmem:[%s444_s2 + $0x58] sm:$0xff]  ;;  %v97_v60 = vld [vmem:[%s444_s2 + $0xe0] sm:$0xff]  ;;  %v63_v63 = vsub.s32 1, %v350_v15  ;;  %v59_v19 = vsub.s32 0, %v350_v15 }
  0x11   :  { %v43_v52 = vshrl.u32 %v41_v44, 16  ;;  %v98_v61 = vld [vmem:[%s444_s2 + $0xe8] sm:$0xff]  ;;  %v256_v1 = vpack.c.bf16 %v80_v58, %v79_v57  ;;  %v19_v2 = vld [vmem:[%s443_s1] sm:$0x3]  ;;  %v99_v8 = vld [vmem:[%s444_s2 + $0xf0] sm:$0xff]  ;;  %s294_s27 = smov [#allocation5]  }
  0x12   :  { %v44_v59 = vxor.u32 %v42_v53, %v40_v48  ;;  %v258_v4 = vpack.c.bf16 %v98_v61, %v97_v60  ;;  %v81_v5 = vld [vmem:[%s444_s2 + $0x60] sm:$0xff]  ;;  %v82_v6 = vld [vmem:[%s444_s2 + $0x68] sm:$0xff]  ;;  %v100_v9 = vld [vmem:[%s444_s2 + $0xf8] sm:$0xff]  ;;  %v64_v11 = vrot.slane %v19_v2, %v63_v63  ;;  %v60_v22 = vrot.slane %v19_v2, %v59_v19  ;;  %s189_s28 = sshll.u32 %s294_s27, 4  ;;  %s190_s28 = int_to_ptr.vmem [resolvable:$true] %s189_s28 }
  0x13   :  { %249 = vmatpush3.bf16.msra.mxu0 %v248_v43  ;;  %v45_v55 = vxor.u32 %v43_v52, %v41_v44  ;;  %v260_v12 = vpack.c.bf16 %v82_v6, %v81_v5  ;;  %v262_v16 = vpack.c.bf16 %v100_v9, %v99_v8  ;;  %v83_v17 = vld [vmem:[%s444_s2 + $0x70] sm:$0xff]  ;;  %v84_v18 = vld [vmem:[%s444_s2 + $0x78] sm:$0xff]  ;;  %vm181_vm2 = vcmask 57344   ;;  %s269_s2 = scalar_lea.vmem %s190_s28, 16  ;;  %s273_s29 = scalar_lea.vmem %s190_s28, 32 }
  0x14   :  { %251 = vmatprep.subr.bf16.mxu0 %v250_v45  ;;  %v46_v0 = vxor.u32 %v44_v59, %v30_v51  ;;  %v264_v20 = vpack.c.bf16 %v84_v18, %v83_v17  ;;  %p270_p0 = scmp.ne.s32.totalorder %s190_s28, %s269_s2  ;;  %p274_p1 = scmp.lt.s32.totalorder %s190_s28, %s190_s28 }
  0x15   :  { %v47_v62 = vxor.u32 %v45_v55, %v30_v51  ;;  %p275_p2 = scmp.lt.s32.totalorder %s273_s29, %s269_s2 }
  0x16   :  { %v48_v7 = vmul.u32 668265263, %v46_v0 }
  0x17   :  { %253 = vmatpush3.bf16.msra.mxu0 %v252_v54  ;;  %v49_v3 = vmul.u32 668265263, %v47_v62  ;;  %p276_p3 = por %p275_p2, %p274_p1 }
  0x18   :  { %255 = vmatprep.subr.bf16.mxu0 %v254_v56  ;;  %v50_v14 = vshrl.u32 %v48_v7, 15 }
  0x19   :  { %v51_v10 = vshrl.u32 %v49_v3, 15  ;;  %p277_p4 = pnand %p276_p3, %p270_p0 }
  0x1a   :  { %v52_v21 = vxor.u32 %v50_v14, %v48_v7 }
  0x1b   :  { %257 = vmatpush3.bf16.msra.mxu0 %v256_v1  ;;  %v53_v13 = vxor.u32 %v51_v10, %v49_v3 }
  0x1c   :  { %259 = vmatprep.subr.bf16.mxu0 %v258_v4  ;;  %vm54_vm1 = vcmp.ge.s32.totalorder %v52_v21, 0 }
  0x1d   :  { %vm55_vm0 = vcmp.ge.s32.totalorder %v53_v13, 0 }
  0x1e   :  { %197 = vmatprep.mubr.msk.f32.mxu0 %vm55_vm0, %v64_v11 }
  0x1f   :  { %261 = vmatpush3.bf16.msra.mxu0 %v260_v12 }
  0x20   :  { %263 = vmatprep.subr.bf16.mxu0 %v262_v16 }
  0x23   :  { %265 = vmatpush3.bf16.msra.mxu0 %v264_v20 }
  0x26   :  { %198 = vmatmul.mubr.msk.f32.vlgmr.msra.gmra.mrb[0].mxu0 %vm54_vm1, %v60_v22 }
  0x8d   :  { %v105_v23 = vpop.permute.xlu0 %104 }
  0x8e   :  { %v110_v25 = vrot.slane %v105_v23, %v59_v19 }
  0xf9   :  { %v231_v24 = vpop.f32.mrb[0].mxu0 }
  0xfa   :  { %v232_v26 = vpop.f32.mrb[1].mxu0 }
  0xfb   :  { %v233_v27 = vadd.f32 %v232_v26, %v231_v24 }
  0xfd   :  { %v178_v28 = vadd.f32 %v233_v27, %v110_v25 }
  0xff   :  { %182 = vst.msk [vmem:[#allocation5] sm:$0x1] %vm181_vm2, %v178_v28 }
 0x100   :  { %280 = shalt.err (!%p277_p4)
}
 0x101   :  { %s281_s6 = scalar_lea.hbm %s446_s4, 16 }
 0x102   :  { %p282_p5 = scmp.ne.s32.totalorder %s446_s4, %s281_s6  ;;  %p285_p6 = scmp.lt.u32.totalorder %s281_s6, %s446_s4 }
 0x104   :  { %p287_p7 = pnand %p285_p6, %p282_p5 }
 0x106   :  { %290 = shalt.err (!%p287_p7)
}
 0x107   :  { %192 = dma.vmem_to_hbm [thread:$0]  %s190_s28, 16, %s446_s4, [#allocation6]  }
 0x108   :  { %291 = dma.done.wait [#allocation6], 16  }
 0x109   :  { %292 = vsyncadd [#allocation6], 4294967280 }
 0x10a   :  { %196 = vsyncpa [#allocation6], 1 }

</bundles_post_ra>
